<compile_context>
chip_gen: v5e
topology: v5e:2x2
jax: 0.10.0
libtpu: 0.0.40
codegen_flags: <defaults>
</compile_context>

<pallas_src>
import functools

import jax
import jax.numpy as jnp
from jax.experimental import pallas as pl
from jax.experimental.pallas import tpu as pltpu


# ----------------------------------------------------------------------------
# Fused kernel: weighted layer pooling of the CLS token + Linear(H, 1) head.
# ----------------------------------------------------------------------------
def _fused_head_kernel(wl_ref, x_ref, fcw_ref, fcb_ref, o_ref):
    """
    wl_ref : SMEM (Lsel,)      f32   pre-normalized layer weights (w / w.sum())
    x_ref  : VMEM (Lsel, B, H)       CLS-token hidden states of selected layers
    fcw_ref: VMEM (1, H)       f32   fc weight in natural (out, in) layout
    fcb_ref: SMEM (1,)         f32   fc bias
    o_ref  : VMEM (B, 1)       f32   logits
    """
    n_layers = x_ref.shape[0]                      # static (e.g. 4)

    # Weighted sum over the few selected layers; f32 accumulator in-register.
    # Upcast inside the kernel so bf16 hidden states stay bf16 over HBM/DMA.
    acc = wl_ref[0] * x_ref[0].astype(jnp.float32)
    for l in range(1, n_layers):                   # static unroll, tiny trip count
        acc = acc + wl_ref[l] * x_ref[l].astype(jnp.float32)

    # TODO(synk): nn.Dropout(0.2) is treated as inference-mode identity here.

    # FC head as a lane-dense reduction: (B, H) * (1, H) -> sum over H -> (B, 1).
    w_row = fcw_ref[...].astype(jnp.float32)
    o_ref[...] = jnp.sum(acc * w_row, axis=-1, keepdims=True) + fcb_ref[0]


# ----------------------------------------------------------------------------
# Model wrapper (glue in plain JAX)
# ----------------------------------------------------------------------------
@functools.partial(jax.jit, static_argnames=("layer_start",))
def feedback_model_forward(all_hidden_states, layer_weights, fc_weight, fc_bias,
                           layer_start=9):
    """all_hidden_states: (L+1, B, S, H); layer_weights: (L+1-layer_start,);
    fc_weight: (1, H) (PyTorch layout); fc_bias: (1,)."""
    # Only pooled[:, 0, :] feeds the head -> gather just the CLS slab of the
    # selected layers (single tiny strided read; Lsel*B*H elements).
    cls_stack = all_hidden_states[layer_start:, :, 0, :]      # (Lsel, B, H)
    Lsel, B, H = cls_stack.shape

    w = layer_weights.astype(jnp.float32)
    w_norm = w / jnp.sum(w)                                   # pre-normalize on host
    fcw = fc_weight.astype(jnp.float32).reshape(1, H)         # keep (1, H): lane-dense
    fcb = fc_bias.astype(jnp.float32).reshape(1)

    return pl.pallas_call(
        _fused_head_kernel,
        out_shape=jax.ShapeDtypeStruct((B, 1), jnp.float32),
        in_specs=[
            pl.BlockSpec(memory_space=pltpu.MemorySpace.SMEM),   # layer weights
            pl.BlockSpec(memory_space=pltpu.MemorySpace.VMEM),   # CLS hidden states
            pl.BlockSpec(memory_space=pltpu.MemorySpace.VMEM),   # fc weight (1, H)
            pl.BlockSpec(memory_space=pltpu.MemorySpace.SMEM),   # fc bias
        ],
        out_specs=pl.BlockSpec(memory_space=pltpu.MemorySpace.VMEM),
    )(w_norm, cls_stack, fcw, fcb)


if __name__ == "__main__":
    # Small synthetic shapes consistent with the module's forward:
    #   num_hidden_layers = 12 -> stack of 13 hidden states; layer_start = 9.
    num_hidden_layers = 12
    layer_start = 9
    B, S, H = 2, 8, 32                               # batch, seq, hidden (small)

    key = jax.random.PRNGKey(0)
    k_hs, k_w, k_b = jax.random.split(key, 3)

    all_hidden_states = jax.random.normal(
        k_hs, (num_hidden_layers + 1, B, S, H), dtype=jnp.float32)

    # Parameters (matching module __init__ shapes / init).
    layer_weights = jnp.ones((num_hidden_layers + 1 - layer_start,), jnp.float32)
    fc_weight = jax.random.normal(k_w, (1, H), dtype=jnp.float32) * 0.02
    fc_bias = jax.random.normal(k_b, (1,), dtype=jnp.float32) * 0.02

    out = feedback_model_forward(all_hidden_states, layer_weights,
                                 fc_weight, fc_bias, layer_start=layer_start)
    out = jax.block_until_ready(out)

    # Pure-JAX reference (mirrors the PyTorch forward).
    x_sel = all_hidden_states[layer_start:]
    wf = layer_weights[:, None, None, None]
    ref_pooled = (wf * x_sel).sum(axis=0) / layer_weights.sum()
    ref_out = ref_pooled[:, 0, :] @ fc_weight.T + fc_bias

    assert out.shape == (B, 1)
    assert jnp.allclose(out, ref_out, atol=1e-5, rtol=1e-5)

    print("KERNEL_OK")
</pallas_src>

<mosaic_0001>
module attributes {stable_mosaic.version = 11 : i64} {
  func.func @_fused_head_kernel(%arg0: memref<4xf32, #tpu.memory_space<smem>>, %arg1: memref<4x2x32xf32, #tpu.memory_space<vmem>>, %arg2: memref<1x32xf32, #tpu.memory_space<vmem>>, %arg3: memref<1xf32, #tpu.memory_space<smem>>, %arg4: memref<2x1xf32, #tpu.memory_space<vmem>>) attributes {dimension_semantics = [], scalar_prefetch = 0 : i64, scratch_operands = 0 : i64, tpu.core_type = #tpu.core_type<tc>} {
    %c0 = arith.constant 0 : index
    %0 = memref.load %arg0[%c0] : memref<4xf32, #tpu.memory_space<smem>>
    %c0_0 = arith.constant 0 : index
    %c0_1 = arith.constant 0 : index
    %c0_2 = arith.constant 0 : index
    %1 = vector.load %arg1[%c0_0, %c0_1, %c0_2] : memref<4x2x32xf32, #tpu.memory_space<vmem>>, vector<1x2x32xf32>
    %2 = vector.shape_cast %1 : vector<1x2x32xf32> to vector<2x32xf32>
    %3 = vector.broadcast %0 : f32 to vector<2x32xf32>
    %4 = arith.mulf %3, %2 : vector<2x32xf32>
    %c1 = arith.constant 1 : index
    %5 = memref.load %arg0[%c1] : memref<4xf32, #tpu.memory_space<smem>>
    %c1_3 = arith.constant 1 : index
    %c0_4 = arith.constant 0 : index
    %c0_5 = arith.constant 0 : index
    %6 = vector.load %arg1[%c1_3, %c0_4, %c0_5] : memref<4x2x32xf32, #tpu.memory_space<vmem>>, vector<1x2x32xf32>
    %7 = vector.shape_cast %6 : vector<1x2x32xf32> to vector<2x32xf32>
    %8 = vector.broadcast %5 : f32 to vector<2x32xf32>
    %9 = arith.mulf %8, %7 : vector<2x32xf32>
    %10 = arith.addf %4, %9 : vector<2x32xf32>
    %c2 = arith.constant 2 : index
    %11 = memref.load %arg0[%c2] : memref<4xf32, #tpu.memory_space<smem>>
    %c2_6 = arith.constant 2 : index
    %c0_7 = arith.constant 0 : index
    %c0_8 = arith.constant 0 : index
    %12 = vector.load %arg1[%c2_6, %c0_7, %c0_8] : memref<4x2x32xf32, #tpu.memory_space<vmem>>, vector<1x2x32xf32>
    %13 = vector.shape_cast %12 : vector<1x2x32xf32> to vector<2x32xf32>
    %14 = vector.broadcast %11 : f32 to vector<2x32xf32>
    %15 = arith.mulf %14, %13 : vector<2x32xf32>
    %16 = arith.addf %10, %15 : vector<2x32xf32>
    %c3 = arith.constant 3 : index
    %17 = memref.load %arg0[%c3] : memref<4xf32, #tpu.memory_space<smem>>
    %c3_9 = arith.constant 3 : index
    %c0_10 = arith.constant 0 : index
    %c0_11 = arith.constant 0 : index
    %18 = vector.load %arg1[%c3_9, %c0_10, %c0_11] : memref<4x2x32xf32, #tpu.memory_space<vmem>>, vector<1x2x32xf32>
    %19 = vector.shape_cast %18 : vector<1x2x32xf32> to vector<2x32xf32>
    %20 = vector.broadcast %17 : f32 to vector<2x32xf32>
    %21 = arith.mulf %20, %19 : vector<2x32xf32>
    %22 = arith.addf %16, %21 : vector<2x32xf32>
    %c0_12 = arith.constant 0 : index
    %c0_13 = arith.constant 0 : index
    %23 = vector.load %arg2[%c0_12, %c0_13] : memref<1x32xf32, #tpu.memory_space<vmem>>, vector<1x32xf32>
    %24 = vector.broadcast %23 : vector<1x32xf32> to vector<2x32xf32>
    %25 = arith.mulf %22, %24 : vector<2x32xf32>
    %cst = arith.constant dense<0.000000e+00> : vector<2xf32>
    %26 = vector.multi_reduction <add>, %25, %cst [1] : vector<2x32xf32> to vector<2xf32>
    %27 = vector.shape_cast %26 : vector<2xf32> to vector<2x1xf32>
    %c0_14 = arith.constant 0 : index
    %28 = memref.load %arg3[%c0_14] : memref<1xf32, #tpu.memory_space<smem>>
    %29 = vector.broadcast %28 : f32 to vector<2x1xf32>
    %30 = arith.addf %27, %29 : vector<2x1xf32>
    %c0_15 = arith.constant 0 : index
    %c0_16 = arith.constant 0 : index
    %31 = vector.load %arg4[%c0_15, %c0_16] : memref<2x1xf32, #tpu.memory_space<vmem>>, vector<2x1xf32>
    tpu.vector_store %arg4[%c0_15, %c0_16], %30 {strides = array<i32>} : memref<2x1xf32, #tpu.memory_space<vmem>>, vector<2x1xf32>,
    return
  }
}

</mosaic_0001>

<bundles_post_ra>
// kernel: feedback_model_forward.1
= control target key start
LH: loop header
LB: loop body
LE: loop exit
PB: predicated region body
PF: predicated region fallthrough
CT: control target
= control target key end

     0   :  { %10 = vsyncpa [#allocation4], 0  ;;  %s94_s18 = smov [#allocation3]   ;;  %s144_s0 = inlined_call_operand.vmem [shape: f32[4], index: 0, kind: input, shape index: {}]   ;;  %s145_s1 = inlined_call_operand.vmem [shape: f32[4,2,32], index: 1, kind: input, shape index: {}]   ;;  %s146_s2 = inlined_call_operand.vmem [shape: f32[1,32], index: 2, kind: input, shape index: {}]   ;;  %s147_s3 = inlined_call_operand.<no memory space> [shape: f32[1], index: 3, kind: input, shape index: {}]   ;;  %s148_s4 = inlined_call_operand.vmem [shape: f32[2,1], index: 4, kind: output, shape index: {}]  }
   0x1   :  { %s16_s17 = sshll.u32 %s144_s0, 4  ;;  %s17_s17 = int_to_ptr.vmem [resolvable:$true] %s16_s17 }
   0x2   :  { %19 = dma.vmem_to_smem %s17_s17, 16, %s94_s18, [#allocation4]  }
   0x3   :  { %92 = dma.done.wait [#allocation4], 16  }
   0x4   :  { %93 = vsyncadd [#allocation4], 4294967280 }
   0x5   :  { %30 = sfence }
   0x6   :  { %s31_s19 = sld [smem:[#allocation3]]  ;;  %v32_v0 = vld [vmem:[%s145_s1] sm:$0x3]  ;;  %v73_v1 = vld [vmem:[%s145_s1 + $0x2] sm:$0x3]  ;;  %vm58_vm0 = vcmask 254976   ;;  %v63_v18 = vstv %s147_s3 }
   0x7   :  { %s72_s20 = sld [smem:[#allocation3 + $0x1]]  ;;  %v75_v3 = vld [vmem:[%s145_s1 + $0x4] sm:$0x3]  ;;  %v77_v6 = vld [vmem:[%s145_s1 + $0x6] sm:$0x3]  ;;  %vm65_vm1 = vcmask 1024  }
   0x8   :  { %s74_s21 = sld [smem:[#allocation3 + $0x2]]  ;;  %v79_v14 = vld [vmem:[%s146_s2] ss:$0 sm:$0xff] }
   0x9   :  { %s76_s22 = sld [smem:[#allocation3 + $0x3]] }
   0xc   :  { %v33_v2 = vstv %s31_s19 }
   0xd   :  { %v34_v4 = vmul.f32 %v33_v2, %v32_v0  ;;  %v38_v5 = vstv %s72_s20 }
   0xe   :  { %v39_v7 = vmul.f32 %v73_v1, %v38_v5  ;;  %v44_v8 = vstv %s74_s21 }
   0xf   :  { %v45_v9 = vmul.f32 %v75_v3, %v44_v8  ;;  %v50_v10 = vstv %s76_s22 }
  0x10   :  { %v40_v11 = vadd.f32 %v39_v7, %v34_v4  ;;  %v51_v12 = vmul.f32 %v77_v6, %v50_v10 }
  0x12   :  { %v46_v13 = vadd.f32 %v45_v9, %v40_v11 }
  0x14   :  { %v52_v15 = vadd.f32 %v51_v12, %v46_v13 }
  0x16   :  { %v57_v16 = vmul.f32 %v79_v14, %v52_v15 }
  0x18   :  { %v59_v17 = vsel %vm58_vm0, %v57_v16, 0.0 }
  0x19   :  { %60 = vadd.xlane.f32.xlu0 %v59_v17 }
  0x8c   :  { %v61_v19 = vpop.xlane.xlu0 %60 }
  0x8d   :  { %v64_v20 = vadd.f32 %v63_v18, %v61_v19 }
  0x8f   :  { %66 = vst.msk [vmem:[%s148_s4] sm:$0x3] %vm65_vm1, %v64_v20 }
  0x90   :  { %71 = vsyncpa [#allocation4], 1 }

</bundles_post_ra>
